<compile_context>
chip_gen: v5e
topology: v5e:2x2
jax: 0.10.0
libtpu: 0.0.40
codegen_flags: <defaults>
</compile_context>

<pallas_src>
import functools

import jax
import jax.numpy as jnp
from jax import lax
from jax.experimental import pallas as pl
from jax.experimental.pallas import tpu as pltpu


def _round_up(x, m):
    return ((x + m - 1) // m) * m


def _residual_scm_kernel(x_ref, w_ref, b_ref, o_ref, *, Wp, out_lanes):
    # x_ref: (B_blk, Cin, SPP)        zero-padded NCHW input, spatial flattened,
    #                                 lane-padded so all tap slices are in bounds
    # w_ref: (9, Cout, Cin)           fused (conv1x1 o conv3x3) weights, tap-major
    # b_ref: (Cout, 1)                fused bias
    # o_ref: (B_blk, Cout, out_lanes) output on the padded-width grid (lanes >= H*Wp and
    #                                 the last 2 columns of every row are garbage,
    #                                 stripped in the wrapper)
    B_blk = x_ref.shape[0]
    Cout = o_ref.shape[1]
    bias = b_ref[...]                                            # (Cout, 1), hoisted

    for b in range(B_blk):
        acc = jnp.zeros((Cout, out_lanes), jnp.float32)
        # 3x3 conv (pad=1) as 9 lane-shifted matmuls: shifting the flattened padded
        # image by dy*Wp + dx is exactly tap (dy, dx); row-wrap only pollutes the
        # discarded padded-width columns.
        for tap in range(9):
            dy, dx = tap // 3, tap % 3
            off = dy * Wp + dx                                   # static lane offset
            patch = x_ref[b, :, pl.ds(off, out_lanes)]           # (Cin, out_lanes)
            acc = acc + jnp.dot(w_ref[tap], patch,
                                preferred_element_type=jnp.float32)
        y = (jnp.tanh(acc + bias) + 1.0) * 0.5
        # Outer ResidualSCM skip: + x  (center tap of the padded input == original x).
        res = x_ref[b, :, pl.ds(Wp + 1, out_lanes)]              # (Cin == Cout, lanes)
        o_ref[b] = (y + res).astype(o_ref.dtype)                 # unmasked lane store


def residual_scm_forward(x_nchw, w1_oihw, b1, w2_oihw, b2, *, batch_block=2):
    """x_nchw: (N, Cin, H, W) f32. Returns (N, Cout, H, W) f32, Cout == Cin."""
    N, Cin, H, W = x_nchw.shape
    Cmid = w1_oihw.shape[0]
    Cout = w2_oihw.shape[0]
    assert Cout == Cin, "ResidualSCM residual add requires in_channel == out_channel"

    Hp, Wp = H + 2, W + 2
    Sp = Hp * Wp                          # padded spatial size (flattened)
    Hq = H * Wp                           # valid output lanes on the padded-width grid
    out_lanes = _round_up(Hq, 128)        # lane-dense compute / store width
    max_off = 2 * Wp + 2                  # largest tap offset
    SPP = _round_up(max(Sp, max_off + out_lanes), 128)   # in-bounds, lane-aligned

    B_blk = batch_block if (N % batch_block == 0) else 1

    # Zero-pad spatially for the 3x3 conv; flatten trailing spatial dims (free reshape,
    # no transpose -> channel-major layout is fed to the kernel as-is), then pad the
    # flattened axis so every shifted slice stays inside the VMEM tile.
    x_pad = jnp.pad(x_nchw, ((0, 0), (0, 0), (1, 1), (1, 1)))
    x_flat = x_pad.reshape(N, Cin, Sp)
    x_flat = jnp.pad(x_flat, ((0, 0), (0, 0), (0, SPP - Sp)))

    # Fuse conv1x1 into conv3x3:  w_eff[tap][co, ci] = sum_cm w2[co,cm] * w1[cm,ci,ky,kx]
    w2_2d = w2_oihw.reshape(Cout, Cmid)
    w_eff = jnp.einsum("om,mikl->kloi", w2_2d, w1_oihw,
                       precision=lax.Precision.HIGHEST).reshape(9, Cout, Cin)
    b_eff = (jnp.einsum("om,m->o", w2_2d, b1,
                        precision=lax.Precision.HIGHEST) + b2).reshape(Cout, 1)

    kernel = functools.partial(_residual_scm_kernel, Wp=Wp, out_lanes=out_lanes)
    out_flat = pl.pallas_call(
        kernel,
        out_shape=jax.ShapeDtypeStruct((N, Cout, out_lanes), jnp.float32),
        grid_spec=pltpu.PrefetchScalarGridSpec(
            num_scalar_prefetch=0,
            grid=(N // B_blk,),
            in_specs=[
                pl.BlockSpec((B_blk, Cin, SPP), lambda n: (n, 0, 0)),
                pl.BlockSpec((9, Cout, Cin), lambda n: (0, 0, 0)),
                pl.BlockSpec((Cout, 1), lambda n: (0, 0)),
            ],
            out_specs=pl.BlockSpec((B_blk, Cout, out_lanes), lambda n: (n, 0, 0)),
        ),
        compiler_params=pltpu.CompilerParams(
            dimension_semantics=("parallel",)),
    )(x_flat, w_eff, b_eff)

    # Drop the lane padding and the 2 garbage columns per row from the padded-width grid.
    return out_flat[:, :, :Hq].reshape(N, Cout, H, Wp)[:, :, :, :W]


def _reference(x_nchw, w1_oihw, b1, w2_oihw, b2):
    """Pure-JAX reference mirroring the module (inner block + outer residual)."""
    y = lax.conv_general_dilated(
        x_nchw, w1_oihw, window_strides=(1, 1), padding=((1, 1), (1, 1)),
        dimension_numbers=("NCHW", "OIHW", "NCHW"),
        precision=lax.Precision.HIGHEST)
    y = y + b1[None, :, None, None]
    y = lax.conv_general_dilated(
        y, w2_oihw, window_strides=(1, 1), padding=((0, 0), (0, 0)),
        dimension_numbers=("NCHW", "OIHW", "NCHW"),
        precision=lax.Precision.HIGHEST)
    y = y + b2[None, :, None, None]
    y = (jnp.tanh(y) + 1.0) / 2.0
    return y + x_nchw  # ResidualSCM: x = block(x) + res


if __name__ == "__main__":
    # ResidualSCM(in_channel=6, out_channel=6, ...): the skip needs Cin == Cout.
    N, C, H, W = 4, 6, 16, 16
    Cmid = max(C // 3, 1)

    key = jax.random.PRNGKey(0)
    kx, kw1, kb1, kw2, kb2 = jax.random.split(key, 5)
    x = jax.random.normal(kx, (N, C, H, W), jnp.float32)
    w1 = jax.random.normal(kw1, (Cmid, C, 3, 3), jnp.float32) * 0.2
    b1 = jax.random.normal(kb1, (Cmid,), jnp.float32) * 0.1
    w2 = jax.random.normal(kw2, (C, Cmid, 1, 1), jnp.float32) * 0.2
    b2 = jax.random.normal(kb2, (C,), jnp.float32) * 0.1

    out = residual_scm_forward(x, w1, b1, w2, b2, batch_block=2)
    jax.block_until_ready(out)

    ref = _reference(x, w1, b1, w2, b2)
    assert out.shape == (N, C, H, W)
    max_err = float(jnp.max(jnp.abs(out - ref)))
    assert jnp.allclose(out, ref, atol=1e-4, rtol=1e-4), max_err

    print("KERNEL_OK")
</pallas_src>

<mosaic_0001>
module attributes {stable_mosaic.version = 11 : i64} {
  func.func @_residual_scm_kernel(%arg0: i32, %arg1: memref<2x6x512xf32, #tpu.memory_space<vmem>>, %arg2: memref<9x6x6xf32, #tpu.memory_space<vmem>>, %arg3: memref<6x1xf32, #tpu.memory_space<vmem>>, %arg4: memref<2x6x384xf32, #tpu.memory_space<vmem>>) attributes {dimension_semantics = [#tpu.dimension_semantics<parallel>], iteration_bounds = array<i64: 2>, scalar_prefetch = 0 : i64, scratch_operands = 0 : i64, tpu.core_type = #tpu.core_type<tc>, window_params = [{transform_indices = @transform_0, window_bounds = array<i64: 2, 6, 512>}, {pipeline_mode = #tpu.pipeline_mode<synchronous>, transform_indices = @transform_1, window_bounds = array<i64: 9, 6, 6>}, {pipeline_mode = #tpu.pipeline_mode<synchronous>, transform_indices = @transform_2, window_bounds = array<i64: 6, 1>}, {transform_indices = @transform_3, window_bounds = array<i64: 2, 6, 384>}]} {
    %c0 = arith.constant 0 : index
    %c0_0 = arith.constant 0 : index
    %0 = vector.load %arg3[%c0, %c0_0] : memref<6x1xf32, #tpu.memory_space<vmem>>, vector<6x1xf32>
    %cst = arith.constant 0.000000e+00 : f32
    %1 = vector.broadcast %cst : f32 to vector<6x384xf32>
    %c0_1 = arith.constant 0 : index
    %c0_2 = arith.constant 0 : index
    %c0_3 = arith.constant 0 : index
    %2 = vector.load %arg1[%c0_1, %c0_2, %c0_3] : memref<2x6x512xf32, #tpu.memory_space<vmem>>, vector<1x6x384xf32>
    %3 = vector.shape_cast %2 : vector<1x6x384xf32> to vector<6x384xf32>
    %c0_4 = arith.constant 0 : index
    %c0_5 = arith.constant 0 : index
    %c0_6 = arith.constant 0 : index
    %4 = vector.load %arg2[%c0_4, %c0_5, %c0_6] : memref<9x6x6xf32, #tpu.memory_space<vmem>>, vector<1x6x6xf32>
    %5 = vector.shape_cast %4 : vector<1x6x6xf32> to vector<6x6xf32>
    %cst_7 = arith.constant dense<0.000000e+00> : vector<6x384xf32>
    %6 = tpu.matmul %5, %3, %cst_7 {dimension_numbers = #tpu.dot_dimension_numbers<[1], [0], [0], [1], [0, 0, 1, 1], [], []>} : vector<6x6xf32>, vector<6x384xf32>, vector<6x384xf32> -> vector<6x384xf32>
    %7 = arith.addf %1, %6 : vector<6x384xf32>
    %c0_8 = arith.constant 0 : index
    %c0_9 = arith.constant 0 : index
    %c1 = arith.constant 1 : index
    %8 = vector.load %arg1[%c0_8, %c0_9, %c1] : memref<2x6x512xf32, #tpu.memory_space<vmem>>, vector<1x6x384xf32>
    %9 = vector.shape_cast %8 : vector<1x6x384xf32> to vector<6x384xf32>
    %c1_10 = arith.constant 1 : index
    %c0_11 = arith.constant 0 : index
    %c0_12 = arith.constant 0 : index
    %10 = vector.load %arg2[%c1_10, %c0_11, %c0_12] : memref<9x6x6xf32, #tpu.memory_space<vmem>>, vector<1x6x6xf32>
    %11 = vector.shape_cast %10 : vector<1x6x6xf32> to vector<6x6xf32>
    %cst_13 = arith.constant dense<0.000000e+00> : vector<6x384xf32>
    %12 = tpu.matmul %11, %9, %cst_13 {dimension_numbers = #tpu.dot_dimension_numbers<[1], [0], [0], [1], [0, 0, 1, 1], [], []>} : vector<6x6xf32>, vector<6x384xf32>, vector<6x384xf32> -> vector<6x384xf32>
    %13 = arith.addf %7, %12 : vector<6x384xf32>
    %c0_14 = arith.constant 0 : index
    %c0_15 = arith.constant 0 : index
    %c2 = arith.constant 2 : index
    %14 = vector.load %arg1[%c0_14, %c0_15, %c2] : memref<2x6x512xf32, #tpu.memory_space<vmem>>, vector<1x6x384xf32>
    %15 = vector.shape_cast %14 : vector<1x6x384xf32> to vector<6x384xf32>
    %c2_16 = arith.constant 2 : index
    %c0_17 = arith.constant 0 : index
    %c0_18 = arith.constant 0 : index
    %16 = vector.load %arg2[%c2_16, %c0_17, %c0_18] : memref<9x6x6xf32, #tpu.memory_space<vmem>>, vector<1x6x6xf32>
    %17 = vector.shape_cast %16 : vector<1x6x6xf32> to vector<6x6xf32>
    %cst_19 = arith.constant dense<0.000000e+00> : vector<6x384xf32>
    %18 = tpu.matmul %17, %15, %cst_19 {dimension_numbers = #tpu.dot_dimension_numbers<[1], [0], [0], [1], [0, 0, 1, 1], [], []>} : vector<6x6xf32>, vector<6x384xf32>, vector<6x384xf32> -> vector<6x384xf32>
    %19 = arith.addf %13, %18 : vector<6x384xf32>
    %c0_20 = arith.constant 0 : index
    %c0_21 = arith.constant 0 : index
    %c18 = arith.constant 18 : index
    %20 = vector.load %arg1[%c0_20, %c0_21, %c18] : memref<2x6x512xf32, #tpu.memory_space<vmem>>, vector<1x6x384xf32>
    %21 = vector.shape_cast %20 : vector<1x6x384xf32> to vector<6x384xf32>
    %c3 = arith.constant 3 : index
    %c0_22 = arith.constant 0 : index
    %c0_23 = arith.constant 0 : index
    %22 = vector.load %arg2[%c3, %c0_22, %c0_23] : memref<9x6x6xf32, #tpu.memory_space<vmem>>, vector<1x6x6xf32>
    %23 = vector.shape_cast %22 : vector<1x6x6xf32> to vector<6x6xf32>
    %cst_24 = arith.constant dense<0.000000e+00> : vector<6x384xf32>
    %24 = tpu.matmul %23, %21, %cst_24 {dimension_numbers = #tpu.dot_dimension_numbers<[1], [0], [0], [1], [0, 0, 1, 1], [], []>} : vector<6x6xf32>, vector<6x384xf32>, vector<6x384xf32> -> vector<6x384xf32>
    %25 = arith.addf %19, %24 : vector<6x384xf32>
    %c0_25 = arith.constant 0 : index
    %c0_26 = arith.constant 0 : index
    %c19 = arith.constant 19 : index
    %26 = vector.load %arg1[%c0_25, %c0_26, %c19] : memref<2x6x512xf32, #tpu.memory_space<vmem>>, vector<1x6x384xf32>
    %27 = vector.shape_cast %26 : vector<1x6x384xf32> to vector<6x384xf32>
    %c4 = arith.constant 4 : index
    %c0_27 = arith.constant 0 : index
    %c0_28 = arith.constant 0 : index
    %28 = vector.load %arg2[%c4, %c0_27, %c0_28] : memref<9x6x6xf32, #tpu.memory_space<vmem>>, vector<1x6x6xf32>
    %29 = vector.shape_cast %28 : vector<1x6x6xf32> to vector<6x6xf32>
    %cst_29 = arith.constant dense<0.000000e+00> : vector<6x384xf32>
    %30 = tpu.matmul %29, %27, %cst_29 {dimension_numbers = #tpu.dot_dimension_numbers<[1], [0], [0], [1], [0, 0, 1, 1], [], []>} : vector<6x6xf32>, vector<6x384xf32>, vector<6x384xf32> -> vector<6x384xf32>
    %31 = arith.addf %25, %30 : vector<6x384xf32>
    %c0_30 = arith.constant 0 : index
    %c0_31 = arith.constant 0 : index
    %c20 = arith.constant 20 : index
    %32 = vector.load %arg1[%c0_30, %c0_31, %c20] : memref<2x6x512xf32, #tpu.memory_space<vmem>>, vector<1x6x384xf32>
    %33 = vector.shape_cast %32 : vector<1x6x384xf32> to vector<6x384xf32>
    %c5 = arith.constant 5 : index
    %c0_32 = arith.constant 0 : index
    %c0_33 = arith.constant 0 : index
    %34 = vector.load %arg2[%c5, %c0_32, %c0_33] : memref<9x6x6xf32, #tpu.memory_space<vmem>>, vector<1x6x6xf32>
    %35 = vector.shape_cast %34 : vector<1x6x6xf32> to vector<6x6xf32>
    %cst_34 = arith.constant dense<0.000000e+00> : vector<6x384xf32>
    %36 = tpu.matmul %35, %33, %cst_34 {dimension_numbers = #tpu.dot_dimension_numbers<[1], [0], [0], [1], [0, 0, 1, 1], [], []>} : vector<6x6xf32>, vector<6x384xf32>, vector<6x384xf32> -> vector<6x384xf32>
    %37 = arith.addf %31, %36 : vector<6x384xf32>
    %c0_35 = arith.constant 0 : index
    %c0_36 = arith.constant 0 : index
    %c36 = arith.constant 36 : index
    %38 = vector.load %arg1[%c0_35, %c0_36, %c36] : memref<2x6x512xf32, #tpu.memory_space<vmem>>, vector<1x6x384xf32>
    %39 = vector.shape_cast %38 : vector<1x6x384xf32> to vector<6x384xf32>
    %c6 = arith.constant 6 : index
    %c0_37 = arith.constant 0 : index
    %c0_38 = arith.constant 0 : index
    %40 = vector.load %arg2[%c6, %c0_37, %c0_38] : memref<9x6x6xf32, #tpu.memory_space<vmem>>, vector<1x6x6xf32>
    %41 = vector.shape_cast %40 : vector<1x6x6xf32> to vector<6x6xf32>
    %cst_39 = arith.constant dense<0.000000e+00> : vector<6x384xf32>
    %42 = tpu.matmul %41, %39, %cst_39 {dimension_numbers = #tpu.dot_dimension_numbers<[1], [0], [0], [1], [0, 0, 1, 1], [], []>} : vector<6x6xf32>, vector<6x384xf32>, vector<6x384xf32> -> vector<6x384xf32>
    %43 = arith.addf %37, %42 : vector<6x384xf32>
    %c0_40 = arith.constant 0 : index
    %c0_41 = arith.constant 0 : index
    %c37 = arith.constant 37 : index
    %44 = vector.load %arg1[%c0_40, %c0_41, %c37] : memref<2x6x512xf32, #tpu.memory_space<vmem>>, vector<1x6x384xf32>
    %45 = vector.shape_cast %44 : vector<1x6x384xf32> to vector<6x384xf32>
    %c7 = arith.constant 7 : index
    %c0_42 = arith.constant 0 : index
    %c0_43 = arith.constant 0 : index
    %46 = vector.load %arg2[%c7, %c0_42, %c0_43] : memref<9x6x6xf32, #tpu.memory_space<vmem>>, vector<1x6x6xf32>
    %47 = vector.shape_cast %46 : vector<1x6x6xf32> to vector<6x6xf32>
    %cst_44 = arith.constant dense<0.000000e+00> : vector<6x384xf32>
    %48 = tpu.matmul %47, %45, %cst_44 {dimension_numbers = #tpu.dot_dimension_numbers<[1], [0], [0], [1], [0, 0, 1, 1], [], []>} : vector<6x6xf32>, vector<6x384xf32>, vector<6x384xf32> -> vector<6x384xf32>
    %49 = arith.addf %43, %48 : vector<6x384xf32>
    %c0_45 = arith.constant 0 : index
    %c0_46 = arith.constant 0 : index
    %c38 = arith.constant 38 : index
    %50 = vector.load %arg1[%c0_45, %c0_46, %c38] : memref<2x6x512xf32, #tpu.memory_space<vmem>>, vector<1x6x384xf32>
    %51 = vector.shape_cast %50 : vector<1x6x384xf32> to vector<6x384xf32>
    %c8 = arith.constant 8 : index
    %c0_47 = arith.constant 0 : index
    %c0_48 = arith.constant 0 : index
    %52 = vector.load %arg2[%c8, %c0_47, %c0_48] : memref<9x6x6xf32, #tpu.memory_space<vmem>>, vector<1x6x6xf32>
    %53 = vector.shape_cast %52 : vector<1x6x6xf32> to vector<6x6xf32>
    %cst_49 = arith.constant dense<0.000000e+00> : vector<6x384xf32>
    %54 = tpu.matmul %53, %51, %cst_49 {dimension_numbers = #tpu.dot_dimension_numbers<[1], [0], [0], [1], [0, 0, 1, 1], [], []>} : vector<6x6xf32>, vector<6x384xf32>, vector<6x384xf32> -> vector<6x384xf32>
    %55 = arith.addf %49, %54 : vector<6x384xf32>
    %56 = vector.broadcast %0 : vector<6x1xf32> to vector<6x384xf32>
    %57 = arith.addf %55, %56 : vector<6x384xf32>
    %58 = math.tanh %57 : vector<6x384xf32>
    %cst_50 = arith.constant 1.000000e+00 : f32
    %59 = vector.broadcast %cst_50 : f32 to vector<6x384xf32>
    %60 = arith.addf %58, %59 : vector<6x384xf32>
    %cst_51 = arith.constant 5.000000e-01 : f32
    %61 = vector.broadcast %cst_51 : f32 to vector<6x384xf32>
    %62 = arith.mulf %60, %61 : vector<6x384xf32>
    %c0_52 = arith.constant 0 : index
    %c0_53 = arith.constant 0 : index
    %c19_54 = arith.constant 19 : index
    %63 = vector.load %arg1[%c0_52, %c0_53, %c19_54] : memref<2x6x512xf32, #tpu.memory_space<vmem>>, vector<1x6x384xf32>
    %64 = vector.shape_cast %63 : vector<1x6x384xf32> to vector<6x384xf32>
    %65 = arith.addf %62, %64 : vector<6x384xf32>
    %c0_55 = arith.constant 0 : index
    %c0_56 = arith.constant 0 : index
    %c0_57 = arith.constant 0 : index
    %66 = vector.load %arg4[%c0_55, %c0_56, %c0_57] : memref<2x6x384xf32, #tpu.memory_space<vmem>>, vector<1x6x384xf32>
    %67 = vector.shape_cast %66 : vector<1x6x384xf32> to vector<6x384xf32>
    %68 = vector.shape_cast %65 : vector<6x384xf32> to vector<1x6x384xf32>
    tpu.vector_store %arg4[%c0_55, %c0_56, %c0_57], %68 {strides = array<i32>} : memref<2x6x384xf32, #tpu.memory_space<vmem>>, vector<1x6x384xf32>,
    %cst_58 = arith.constant 0.000000e+00 : f32
    %69 = vector.broadcast %cst_58 : f32 to vector<6x384xf32>
    %c1_59 = arith.constant 1 : index
    %c0_60 = arith.constant 0 : index
    %c0_61 = arith.constant 0 : index
    %70 = vector.load %arg1[%c1_59, %c0_60, %c0_61] : memref<2x6x512xf32, #tpu.memory_space<vmem>>, vector<1x6x384xf32>
    %71 = vector.shape_cast %70 : vector<1x6x384xf32> to vector<6x384xf32>
    %c0_62 = arith.constant 0 : index
    %c0_63 = arith.constant 0 : index
    %c0_64 = arith.constant 0 : index
    %72 = vector.load %arg2[%c0_62, %c0_63, %c0_64] : memref<9x6x6xf32, #tpu.memory_space<vmem>>, vector<1x6x6xf32>
    %73 = vector.shape_cast %72 : vector<1x6x6xf32> to vector<6x6xf32>
    %cst_65 = arith.constant dense<0.000000e+00> : vector<6x384xf32>
    %74 = tpu.matmul %73, %71, %cst_65 {dimension_numbers = #tpu.dot_dimension_numbers<[1], [0], [0], [1], [0, 0, 1, 1], [], []>} : vector<6x6xf32>, vector<6x384xf32>, vector<6x384xf32> -> vector<6x384xf32>
    %75 = arith.addf %69, %74 : vector<6x384xf32>
    %c1_66 = arith.constant 1 : index
    %c0_67 = arith.constant 0 : index
    %c1_68 = arith.constant 1 : index
    %76 = vector.load %arg1[%c1_66, %c0_67, %c1_68] : memref<2x6x512xf32, #tpu.memory_space<vmem>>, vector<1x6x384xf32>
    %77 = vector.shape_cast %76 : vector<1x6x384xf32> to vector<6x384xf32>
    %c1_69 = arith.constant 1 : index
    %c0_70 = arith.constant 0 : index
    %c0_71 = arith.constant 0 : index
    %78 = vector.load %arg2[%c1_69, %c0_70, %c0_71] : memref<9x6x6xf32, #tpu.memory_space<vmem>>, vector<1x6x6xf32>
    %79 = vector.shape_cast %78 : vector<1x6x6xf32> to vector<6x6xf32>
    %cst_72 = arith.constant dense<0.000000e+00> : vector<6x384xf32>
    %80 = tpu.matmul %79, %77, %cst_72 {dimension_numbers = #tpu.dot_dimension_numbers<[1], [0], [0], [1], [0, 0, 1, 1], [], []>} : vector<6x6xf32>, vector<6x384xf32>, vector<6x384xf32> -> vector<6x384xf32>
    %81 = arith.addf %75, %80 : vector<6x384xf32>
    %c1_73 = arith.constant 1 : index
    %c0_74 = arith.constant 0 : index
    %c2_75 = arith.constant 2 : index
    %82 = vector.load %arg1[%c1_73, %c0_74, %c2_75] : memref<2x6x512xf32, #tpu.memory_space<vmem>>, vector<1x6x384xf32>
    %83 = vector.shape_cast %82 : vector<1x6x384xf32> to vector<6x384xf32>
    %c2_76 = arith.constant 2 : index
    %c0_77 = arith.constant 0 : index
    %c0_78 = arith.constant 0 : index
    %84 = vector.load %arg2[%c2_76, %c0_77, %c0_78] : memref<9x6x6xf32, #tpu.memory_space<vmem>>, vector<1x6x6xf32>
    %85 = vector.shape_cast %84 : vector<1x6x6xf32> to vector<6x6xf32>
    %cst_79 = arith.constant dense<0.000000e+00> : vector<6x384xf32>
    %86 = tpu.matmul %85, %83, %cst_79 {dimension_numbers = #tpu.dot_dimension_numbers<[1], [0], [0], [1], [0, 0, 1, 1], [], []>} : vector<6x6xf32>, vector<6x384xf32>, vector<6x384xf32> -> vector<6x384xf32>
    %87 = arith.addf %81, %86 : vector<6x384xf32>
    %c1_80 = arith.constant 1 : index
    %c0_81 = arith.constant 0 : index
    %c18_82 = arith.constant 18 : index
    %88 = vector.load %arg1[%c1_80, %c0_81, %c18_82] : memref<2x6x512xf32, #tpu.memory_space<vmem>>, vector<1x6x384xf32>
    %89 = vector.shape_cast %88 : vector<1x6x384xf32> to vector<6x384xf32>
    %c3_83 = arith.constant 3 : index
    %c0_84 = arith.constant 0 : index
    %c0_85 = arith.constant 0 : index
    %90 = vector.load %arg2[%c3_83, %c0_84, %c0_85] : memref<9x6x6xf32, #tpu.memory_space<vmem>>, vector<1x6x6xf32>
    %91 = vector.shape_cast %90 : vector<1x6x6xf32> to vector<6x6xf32>
    %cst_86 = arith.constant dense<0.000000e+00> : vector<6x384xf32>
    %92 = tpu.matmul %91, %89, %cst_86 {dimension_numbers = #tpu.dot_dimension_numbers<[1], [0], [0], [1], [0, 0, 1, 1], [], []>} : vector<6x6xf32>, vector<6x384xf32>, vector<6x384xf32> -> vector<6x384xf32>
    %93 = arith.addf %87, %92 : vector<6x384xf32>
    %c1_87 = arith.constant 1 : index
    %c0_88 = arith.constant 0 : index
    %c19_89 = arith.constant 19 : index
    %94 = vector.load %arg1[%c1_87, %c0_88, %c19_89] : memref<2x6x512xf32, #tpu.memory_space<vmem>>, vector<1x6x384xf32>
    %95 = vector.shape_cast %94 : vector<1x6x384xf32> to vector<6x384xf32>
    %c4_90 = arith.constant 4 : index
    %c0_91 = arith.constant 0 : index
    %c0_92 = arith.constant 0 : index
    %96 = vector.load %arg2[%c4_90, %c0_91, %c0_92] : memref<9x6x6xf32, #tpu.memory_space<vmem>>, vector<1x6x6xf32>
    %97 = vector.shape_cast %96 : vector<1x6x6xf32> to vector<6x6xf32>
    %cst_93 = arith.constant dense<0.000000e+00> : vector<6x384xf32>
    %98 = tpu.matmul %97, %95, %cst_93 {dimension_numbers = #tpu.dot_dimension_numbers<[1], [0], [0], [1], [0, 0, 1, 1], [], []>} : vector<6x6xf32>, vector<6x384xf32>, vector<6x384xf32> -> vector<6x384xf32>
    %99 = arith.addf %93, %98 : vector<6x384xf32>
    %c1_94 = arith.constant 1 : index
    %c0_95 = arith.constant 0 : index
    %c20_96 = arith.constant 20 : index
    %100 = vector.load %arg1[%c1_94, %c0_95, %c20_96] : memref<2x6x512xf32, #tpu.memory_space<vmem>>, vector<1x6x384xf32>
    %101 = vector.shape_cast %100 : vector<1x6x384xf32> to vector<6x384xf32>
    %c5_97 = arith.constant 5 : index
    %c0_98 = arith.constant 0 : index
    %c0_99 = arith.constant 0 : index
    %102 = vector.load %arg2[%c5_97, %c0_98, %c0_99] : memref<9x6x6xf32, #tpu.memory_space<vmem>>, vector<1x6x6xf32>
    %103 = vector.shape_cast %102 : vector<1x6x6xf32> to vector<6x6xf32>
    %cst_100 = arith.constant dense<0.000000e+00> : vector<6x384xf32>
    %104 = tpu.matmul %103, %101, %cst_100 {dimension_numbers = #tpu.dot_dimension_numbers<[1], [0], [0], [1], [0, 0, 1, 1], [], []>} : vector<6x6xf32>, vector<6x384xf32>, vector<6x384xf32> -> vector<6x384xf32>
    %105 = arith.addf %99, %104 : vector<6x384xf32>
    %c1_101 = arith.constant 1 : index
    %c0_102 = arith.constant 0 : index
    %c36_103 = arith.constant 36 : index
    %106 = vector.load %arg1[%c1_101, %c0_102, %c36_103] : memref<2x6x512xf32, #tpu.memory_space<vmem>>, vector<1x6x384xf32>
    %107 = vector.shape_cast %106 : vector<1x6x384xf32> to vector<6x384xf32>
    %c6_104 = arith.constant 6 : index
    %c0_105 = arith.constant 0 : index
    %c0_106 = arith.constant 0 : index
    %108 = vector.load %arg2[%c6_104, %c0_105, %c0_106] : memref<9x6x6xf32, #tpu.memory_space<vmem>>, vector<1x6x6xf32>
    %109 = vector.shape_cast %108 : vector<1x6x6xf32> to vector<6x6xf32>
    %cst_107 = arith.constant dense<0.000000e+00> : vector<6x384xf32>
    %110 = tpu.matmul %109, %107, %cst_107 {dimension_numbers = #tpu.dot_dimension_numbers<[1], [0], [0], [1], [0, 0, 1, 1], [], []>} : vector<6x6xf32>, vector<6x384xf32>, vector<6x384xf32> -> vector<6x384xf32>
    %111 = arith.addf %105, %110 : vector<6x384xf32>
    %c1_108 = arith.constant 1 : index
    %c0_109 = arith.constant 0 : index
    %c37_110 = arith.constant 37 : index
    %112 = vector.load %arg1[%c1_108, %c0_109, %c37_110] : memref<2x6x512xf32, #tpu.memory_space<vmem>>, vector<1x6x384xf32>
    %113 = vector.shape_cast %112 : vector<1x6x384xf32> to vector<6x384xf32>
    %c7_111 = arith.constant 7 : index
    %c0_112 = arith.constant 0 : index
    %c0_113 = arith.constant 0 : index
    %114 = vector.load %arg2[%c7_111, %c0_112, %c0_113] : memref<9x6x6xf32, #tpu.memory_space<vmem>>, vector<1x6x6xf32>
    %115 = vector.shape_cast %114 : vector<1x6x6xf32> to vector<6x6xf32>
    %cst_114 = arith.constant dense<0.000000e+00> : vector<6x384xf32>
    %116 = tpu.matmul %115, %113, %cst_114 {dimension_numbers = #tpu.dot_dimension_numbers<[1], [0], [0], [1], [0, 0, 1, 1], [], []>} : vector<6x6xf32>, vector<6x384xf32>, vector<6x384xf32> -> vector<6x384xf32>
    %117 = arith.addf %111, %116 : vector<6x384xf32>
    %c1_115 = arith.constant 1 : index
    %c0_116 = arith.constant 0 : index
    %c38_117 = arith.constant 38 : index
    %118 = vector.load %arg1[%c1_115, %c0_116, %c38_117] : memref<2x6x512xf32, #tpu.memory_space<vmem>>, vector<1x6x384xf32>
    %119 = vector.shape_cast %118 : vector<1x6x384xf32> to vector<6x384xf32>
    %c8_118 = arith.constant 8 : index
    %c0_119 = arith.constant 0 : index
    %c0_120 = arith.constant 0 : index
    %120 = vector.load %arg2[%c8_118, %c0_119, %c0_120] : memref<9x6x6xf32, #tpu.memory_space<vmem>>, vector<1x6x6xf32>
    %121 = vector.shape_cast %120 : vector<1x6x6xf32> to vector<6x6xf32>
    %cst_121 = arith.constant dense<0.000000e+00> : vector<6x384xf32>
    %122 = tpu.matmul %121, %119, %cst_121 {dimension_numbers = #tpu.dot_dimension_numbers<[1], [0], [0], [1], [0, 0, 1, 1], [], []>} : vector<6x6xf32>, vector<6x384xf32>, vector<6x384xf32> -> vector<6x384xf32>
    %123 = arith.addf %117, %122 : vector<6x384xf32>
    %124 = vector.broadcast %0 : vector<6x1xf32> to vector<6x384xf32>
    %125 = arith.addf %123, %124 : vector<6x384xf32>
    %126 = math.tanh %125 : vector<6x384xf32>
    %cst_122 = arith.constant 1.000000e+00 : f32
    %127 = vector.broadcast %cst_122 : f32 to vector<6x384xf32>
    %128 = arith.addf %126, %127 : vector<6x384xf32>
    %cst_123 = arith.constant 5.000000e-01 : f32
    %129 = vector.broadcast %cst_123 : f32 to vector<6x384xf32>
    %130 = arith.mulf %128, %129 : vector<6x384xf32>
    %c1_124 = arith.constant 1 : index
    %c0_125 = arith.constant 0 : index
    %c19_126 = arith.constant 19 : index
    %131 = vector.load %arg1[%c1_124, %c0_125, %c19_126] : memref<2x6x512xf32, #tpu.memory_space<vmem>>, vector<1x6x384xf32>
    %132 = vector.shape_cast %131 : vector<1x6x384xf32> to vector<6x384xf32>
    %133 = arith.addf %130, %132 : vector<6x384xf32>
    %c1_127 = arith.constant 1 : index
    %c0_128 = arith.constant 0 : index
    %c0_129 = arith.constant 0 : index
    %134 = vector.load %arg4[%c1_127, %c0_128, %c0_129] : memref<2x6x384xf32, #tpu.memory_space<vmem>>, vector<1x6x384xf32>
    %135 = vector.shape_cast %134 : vector<1x6x384xf32> to vector<6x384xf32>
    %136 = vector.shape_cast %133 : vector<6x384xf32> to vector<1x6x384xf32>
    tpu.vector_store %arg4[%c1_127, %c0_128, %c0_129], %136 {strides = array<i32>} : memref<2x6x384xf32, #tpu.memory_space<vmem>>, vector<1x6x384xf32>,
    return
  }
  func.func @transform_0(%arg0: i32) -> (i32, i32, i32) {
    %c0_i32 = arith.constant 0 : i32
    %c0_i32_0 = arith.constant 0 : i32
    %c0_i32_1 = arith.constant 0 : i32
    return %arg0, %c0_i32, %c0_i32_0 : i32, i32, i32
  }
  func.func @transform_1(%arg0: i32) -> (i32, i32, i32) {
    %c0_i32 = arith.constant 0 : i32
    %c0_i32_0 = arith.constant 0 : i32
    %c0_i32_1 = arith.constant 0 : i32
    %c0_i32_2 = arith.constant 0 : i32
    return %c0_i32, %c0_i32_0, %c0_i32_1 : i32, i32, i32
  }
  func.func @transform_2(%arg0: i32) -> (i32, i32) {
    %c0_i32 = arith.constant 0 : i32
    %c0_i32_0 = arith.constant 0 : i32
    %c0_i32_1 = arith.constant 0 : i32
    return %c0_i32, %c0_i32_0 : i32, i32
  }
  func.func @transform_3(%arg0: i32) -> (i32, i32, i32) {
    %c0_i32 = arith.constant 0 : i32
    %c0_i32_0 = arith.constant 0 : i32
    %c0_i32_1 = arith.constant 0 : i32
    return %arg0, %c0_i32, %c0_i32_0 : i32, i32, i32
  }
}

</mosaic_0001>

<bundles_post_ra>
// kernel: tpu_custom_call.1
= control target key start
LH: loop header
LB: loop body
LE: loop exit
PB: predicated region body
PF: predicated region fallthrough
CT: control target
= control target key end

     0   :  { %s2012_s12 = smov 0   ;;  %s2429_s0 = inlined_call_operand.vmem [shape: f32[4,6,512], index: 0, kind: input, shape index: {}]   ;;  %s2430_s1 = inlined_call_operand.vmem [shape: f32[9,6,6], index: 1, kind: input, shape index: {}]   ;;  %s2431_s2 = inlined_call_operand.vmem [shape: f32[6,1], index: 2, kind: input, shape index: {}]   ;;  %s2432_s3 = inlined_call_operand.vmem [shape: f32[4,6,384], index: 3, kind: output, shape index: {}]  }
   0x1 LB: > { %s1799_s13 = sadd.s32 4294967295, %s1981_s12   ;;  %p1803_p0 = scmp.ge.s32.totalorder %s1981_s12, 1  ;;  %s1981_s12 = sphi %s2012_s12, %s13_s12  }
   0x2   : > { %p139_p1 = scmp.lt.s32.totalorder %s1981_s12, 3 }
   0x4   : > { %p140_p2 = pnand %p1803_p0, %p139_p1 }
   0x5   : > { %s1804_s14 = sshll.u32 (!%p140_p2), %s1799_s13, 1  ;;  %s1983_s19 = smov (!%p140_p2), 127  }
   0x6   : > { %143 = sbr.rel (%p140_p2) target bundleno = 445 (0x1bd), region = 32  ;;  %p166_p3 = scmp.lt.s32.totalorder (!%p140_p2), %s1804_s14, 3 }
   0x7   : > { %s1984_s20 = smov (!%p140_p2), 126   ;;  %s1985_s21 = smov (!%p140_p2), 110  }
   0x8   : > { %s1986_s22 = smov (!%p140_p2), 109   ;;  %s1987_s23 = smov (!%p140_p2), 108  }
   0x9   : > { %s1988_s24 = smov (!%p140_p2), 92   ;;  %s1989_s25 = smov (!%p140_p2), 91  }
   0xa   : > { %s1990_s26 = smov (!%p140_p2), 90  }
   0xb   : > { %s2434_s14 = smov (!%p166_p3, %s1804_s14), 3  ;;  %vm207_vm0 = vcmask 1045504   ;;  %vm203_vm1 = vcmask 48128   ;;  %v183_v11 = vld [vmem:[%s2430_s1] sm:$0x3f]  ;;  %vm199_vm2 = vcmask 1039360  }
   0xc   : > { %s1942_s15 = sshll.u32 %s2434_s14, 5  ;;  %vm353_vm3 = vcmask 1031168   ;;  %v1809_v21 = vld [vmem:[%s2430_s1 + $0x8] sm:$0x3f]  ;;  %v1822_v28 = vld [vmem:[%s2430_s1 + $0x10] sm:$0x3f] }
   0xd   : > { %s2026_s18 = scalar_lea.vmem %s2429_s0, %s1942_s15  ;;  %vm439_vm4 = vcmask 900096   ;;  %v1829_v35 = vld [vmem:[%s2430_s1 + $0x18] sm:$0x3f]  ;;  %vm525_vm5 = vcmask 891904   ;;  %v1836_v40 = vld [vmem:[%s2430_s1 + $0x20] sm:$0x3f] }
   0xe   : > { %v2029_v0 = vld [vmem:[%s2026_s18 + $0x10] sm:$0x3f]  ;;  %v180_v1 = vld [vmem:[%s2026_s18] sm:$0x3f]  ;;  %v184_v2 = vld [vmem:[%s2026_s18 + $0x18] sm:$0x3f] }
   0xf   : > { %195 = vrot.lane.b32.xlu1 %v2029_v0, %s1983_s19  ;;  %191 = vrot.lane.b32.xlu0 %v180_v1, %s1983_s19  ;;  %v2038_v3 = vld [vmem:[%s2026_s18 + $0x8] sm:$0x3f]  ;;  %v2085_v4 = vld [vmem:[%s2026_s18 + $0x20] sm:$0x3f]  ;;  %vm611_vm6 = vcmask 883712   ;;  %v1991_v54 = vmov 0  }
  0x10   : > { %345 = vrot.lane.b32.xlu2 %v180_v1, %s1984_s20  ;;  %v2090_v5 = vld [vmem:[%s2026_s18 + $0x30] sm:$0x3f]  ;;  %v2093_v6 = vld [vmem:[%s2026_s18 + $0x28] sm:$0x3f]  ;;  %v2100_v7 = vld [vmem:[%s2026_s18 + $0x38] sm:$0x3f]  ;;  %1816 = vmatpush.msk.msra.mxu3 %vm207_vm0, %v180_v1 }
  0x11   : > { %1817 = vmatmul.msk.f32.vlgmr.msra.gmra.mxu3 %vm203_vm1, %v183_v11  ;;  %v1843_v47 = vld [vmem:[%s2430_s1 + $0x28] sm:$0x3f]  ;;  %v179_v53 = vld [vmem:[%s2431_s2] sm:$0x3f]  ;;  %1961 = vset.pattern.permute.xlu1 %v1991_v54  ;;  %vm697_vm7 = vcmask 752640   ;;  %vm783_vm8 = vcmask 744448  }
  0x12   : > { %1962 = vset.pattern.permute.xlu0 %v1991_v54  ;;  %v1850_v57 = vld [vmem:[%s2430_s1 + $0x30] sm:$0x3f]  ;;  %vm869_vm9 = vcmask 736256   ;;  %s1943_s15 = smul.u32 24, %s2434_s14 }
  0x14   : > { %s2408_s18 = scalar_lea.vmem %s2432_s3, %s1943_s15 }
  0x17   : > { %197 = vrot.lane.b32.xlu1 %v184_v2, %s1983_s19  ;;  %193 = vrot.lane.b32.xlu0 %v2038_v3, %s1983_s19 }
  0x18   : > { %347 = vrot.lane.b32.xlu2 %v2038_v3, %s1984_s20 }
  0x1f   : > { %351 = vrot.lane.b32.xlu1 %v184_v2, %s1984_s20  ;;  %349 = vrot.lane.b32.xlu0 %v2029_v0, %s1984_s20 }
  0x20   : > { %431 = vrot.lane.b32.xlu2 %v180_v1, %s1985_s21 }
  0x27   : > { %435 = vrot.lane.b32.xlu1 %v2029_v0, %s1985_s21  ;;  %433 = vrot.lane.b32.xlu0 %v2038_v3, %s1985_s21 }
  0x28   : > { %437 = vrot.lane.b32.xlu2 %v184_v2, %s1985_s21 }
  0x2f   : > { %519 = vrot.lane.b32.xlu1 %v2038_v3, %s1986_s22  ;;  %517 = vrot.lane.b32.xlu0 %v180_v1, %s1986_s22 }
  0x30   : > { %521 = vrot.lane.b32.xlu2 %v2029_v0, %s1986_s22 }
  0x37   : > { %603 = vrot.lane.b32.xlu1 %v180_v1, %s1987_s23  ;;  %523 = vrot.lane.b32.xlu0 %v184_v2, %s1986_s22 }
  0x38   : > { %605 = vrot.lane.b32.xlu2 %v2038_v3, %s1987_s23 }
  0x3f   : > { %609 = vrot.lane.b32.xlu1 %v184_v2, %s1987_s23  ;;  %607 = vrot.lane.b32.xlu0 %v2029_v0, %s1987_s23 }
  0x40   : > { %689 = vrot.lane.b32.xlu2 %v180_v1, %s1988_s24 }
  0x47   : > { %693 = vrot.lane.b32.xlu1 %v2029_v0, %s1988_s24  ;;  %691 = vrot.lane.b32.xlu0 %v2038_v3, %s1988_s24 }
  0x48   : > { %695 = vrot.lane.b32.xlu2 %v184_v2, %s1988_s24 }
  0x4f   : > { %777 = vrot.lane.b32.xlu1 %v2038_v3, %s1989_s25  ;;  %775 = vrot.lane.b32.xlu0 %v180_v1, %s1989_s25 }
  0x50   : > { %779 = vrot.lane.b32.xlu2 %v2029_v0, %s1989_s25 }
  0x57   : > { %861 = vrot.lane.b32.xlu1 %v180_v1, %s1990_s26  ;;  %781 = vrot.lane.b32.xlu0 %v184_v2, %s1989_s25 }
  0x58   : > { %863 = vrot.lane.b32.xlu2 %v2038_v3, %s1990_s26 }
  0x5f   : > { %867 = vrot.lane.b32.xlu1 %v184_v2, %s1990_s26  ;;  %865 = vrot.lane.b32.xlu0 %v2029_v0, %s1990_s26 }
  0x60   : > { %982 = vrot.lane.b32.xlu2 %v2085_v4, %s1983_s19 }
  0x67   : > { %986 = vrot.lane.b32.xlu1 %v2090_v5, %s1983_s19  ;;  %984 = vrot.lane.b32.xlu0 %v2093_v6, %s1983_s19 }
  0x68   : > { %988 = vrot.lane.b32.xlu2 %v2100_v7, %s1983_s19 }
  0x6a   : > { %v346_v8 = vpop.permute.xlu2 %345 }
  0x6f   : > { %1134 = vrot.lane.b32.xlu1 %v2093_v6, %s1984_s20  ;;  %1132 = vrot.lane.b32.xlu0 %v2085_v4, %s1984_s20 }
  0x70   : > { %1136 = vrot.lane.b32.xlu2 %v2090_v5, %s1984_s20 }
  0x72   : > { %v348_v9 = vpop.permute.xlu2 %347 }
  0x73   : > { %v354_v20 = vsel %vm353_vm3, %v346_v8, %v348_v9 }
  0x77   : > { %1216 = vrot.lane.b32.xlu1 %v2085_v4, %s1985_s21  ;;  %1138 = vrot.lane.b32.xlu0 %v2100_v7, %s1984_s20 }
  0x78   : > { %1218 = vrot.lane.b32.xlu2 %v2093_v6, %s1985_s21 }
  0x7a   : > { %v432_v10 = vpop.permute.xlu2 %431 }
  0x7f   : > { %1222 = vrot.lane.b32.xlu1 %v2100_v7, %s1985_s21  ;;  %1220 = vrot.lane.b32.xlu0 %v2090_v5, %s1985_s21 }
  0x80   : > { %1300 = vrot.lane.b32.xlu2 %v2085_v4, %s1986_s22 }
  0x81   : > { %v196_v12 = vpop.permute.xlu1 %195  ;;  %v192_v13 = vpop.permute.xlu0 %191 }
  0x82   : > { %v438_v14 = vpop.permute.xlu2 %437 }
  0x87   : > { %1304 = vrot.lane.b32.xlu1 %v2090_v5, %s1986_s22  ;;  %1302 = vrot.lane.b32.xlu0 %v2093_v6, %s1986_s22 }
  0x88   : > { %1306 = vrot.lane.b32.xlu2 %v2100_v7, %s1986_s22 }
  0x89   : > { %v198_v15 = vpop.permute.xlu1 %197  ;;  %v194_v16 = vpop.permute.xlu0 %193 }
  0x8a   : > { %v200_v17 = vsel %vm199_vm2, %v192_v13, %v194_v16  ;;  %v201_v18 = vsel %vm199_vm2, %v194_v16, %v196_v12  ;;  %v202_v19 = vsel %vm199_vm2, %v196_v12, %v198_v15  ;;  %v2140_v22 = vpop.permute.xlu2 %521 }
  0x8b   : > { %1810 = vmatpush.msk.msra.mxu0 %vm207_vm0, %v200_v17  ;;  %1812 = vmatpush.msk.msra.mxu1 %vm207_vm0, %v201_v18 }
  0x8c   : > { %1814 = vmatpush.msk.msra.mxu2 %vm207_vm0, %v202_v19  ;;  %1811 = vmatmul.msk.f32.vlgmr.msra.gmra.mxu0 %vm203_vm1, %v1809_v21 }
  0x8d   : > { %1818 = vmatpush.msk.msrb.mxu0 %vm207_vm0, %v2038_v3  ;;  %1820 = vmatpush.msk.msrb.mxu1 %vm207_vm0, %v2029_v0  ;;  %v1857_v0 = vld [vmem:[%s2430_s1 + $0x38] sm:$0x3f] }
  0x8e   : > { %1823 = vmatpush.msk.msrb.mxu2 %vm207_vm0, %v354_v20  ;;  %1813 = vmatmul.msk.f32.vlgmr.msra.gmra.mxu1 %vm203_vm1, %v1809_v21  ;;  %v1875_v20 = vld [vmem:[%s2430_s1 + $0x8] sm:$0x3f] }
  0x8f   : > { %1815 = vmatmul.msk.f32.vlgmr.msra.gmra.mxu2 %vm203_vm1, %v1809_v21  ;;  %1386 = vrot.lane.b32.xlu1 %v2093_v6, %s1987_s23 }
  0x90   : > { %1384 = vrot.lane.b32.xlu0 %v2085_v4, %s1987_s23  ;;  %1388 = vrot.lane.b32.xlu2 %v2090_v5, %s1987_s23 }
  0x91   : > { %v352_v23 = vpop.permute.xlu1 %351  ;;  %v350_v24 = vpop.permute.xlu0 %349 }
  0x92   : > { %v356_v25 = vsel %vm353_vm3, %v350_v24, %v352_v23  ;;  %v355_v26 = vsel %vm353_vm3, %v348_v9, %v350_v24  ;;  %v606_v27 = vpop.permute.xlu2 %605  ;;  %v1864_v9 = vld [vmem:[%s2430_s1 + $0x40] sm:$0x3f] }
  0x93   : > { %1825 = vmatpush.msk.msrb.mxu3 %vm207_vm0, %v355_v26  ;;  %1827 = vmatpush.msk.msra.mxu0 %vm207_vm0, %v356_v25 }
  0x94   : > { %1826 = vmatmul.msk.f32.vlgmr.msrb.gmra.mxu3 %vm203_vm1, %v1822_v28  ;;  %1819 = vmatmul.msk.f32.vlgmr.msrb.gmra.mxu0 %vm203_vm1, %v183_v11 }
  0x96   : > { %1821 = vmatmul.msk.f32.vlgmr.msrb.gmra.mxu1 %vm203_vm1, %v183_v11 }
  0x97   : > { %1824 = vmatmul.msk.f32.vlgmr.msrb.gmra.mxu2 %vm203_vm1, %v1822_v28  ;;  %1468 = vrot.lane.b32.xlu1 %v2085_v4, %s1988_s24 }
  0x98   : > { %1390 = vrot.lane.b32.xlu0 %v2100_v7, %s1987_s23  ;;  %1470 = vrot.lane.b32.xlu2 %v2093_v6, %s1988_s24 }
  0x99   : > { %v436_v29 = vpop.permute.xlu1 %435  ;;  %v434_v30 = vpop.permute.xlu0 %433 }
  0x9a   : > { %v442_v31 = vsel %vm439_vm4, %v436_v29, %v438_v14  ;;  %v440_v32 = vsel %vm439_vm4, %v432_v10, %v434_v30  ;;  %v441_v33 = vsel %vm439_vm4, %v434_v30, %v436_v29  ;;  %v690_v34 = vpop.permute.xlu2 %689 }
  0x9b   : > { %1830 = vmatpush.msk.msra.mxu1 %vm207_vm0, %v440_v32  ;;  %1832 = vmatpush.msk.msra.mxu2 %vm207_vm0, %v441_v33  ;;  %v1895_v32 = vld [vmem:[%s2430_s1 + $0x18] sm:$0x3f] }
  0x9c   : > { %1834 = vmatpush.msk.msra.mxu3 %vm207_vm0, %v442_v31  ;;  %1828 = vmatmul.msk.f32.vlgmr.msra.gmra.mxu0 %vm203_vm1, %v1822_v28 }
  0x9d   : > { %1835 = vmatmul.msk.f32.vlgmr.msra.gmra.mxu3 %vm203_vm1, %v1829_v35 }
  0x9e   : > { %1831 = vmatmul.msk.f32.vlgmr.msra.gmra.mxu1 %vm203_vm1, %v1829_v35 }
  0x9f   : > { %1833 = vmatmul.msk.f32.vlgmr.msra.gmra.mxu2 %vm203_vm1, %v1829_v35  ;;  %1474 = vrot.lane.b32.xlu1 %v2100_v7, %s1988_s24 }
  0xa0   : > { %1472 = vrot.lane.b32.xlu0 %v2090_v5, %s1988_s24  ;;  %1552 = vrot.lane.b32.xlu2 %v2085_v4, %s1989_s25 }
  0xa1   : > { %v520_v36 = vpop.permute.xlu1 %519  ;;  %v518_v37 = vpop.permute.xlu0 %517 }
  0xa2   : > { %v2197_v38 = vsel %vm525_vm5, %v520_v36, %v2140_v22  ;;  %v2200_v39 = vsel %vm525_vm5, %v518_v37, %v520_v36  ;;  %v696_v41 = vpop.permute.xlu2 %695 }
  0xa3   : > { %1837 = vmatpush.msk.msrb.mxu0 %vm207_vm0, %v2200_v39  ;;  %1839 = vmatpush.msk.msrb.mxu1 %vm207_vm0, %v2197_v38 }
  0xa4   : > { %1838 = vmatmul.msk.f32.vlgmr.msrb.gmra.mxu0 %vm203_vm1, %v1836_v40 }
  0xa6   : > { %1840 = vmatmul.msk.f32.vlgmr.msrb.gmra.mxu1 %vm203_vm1, %v1836_v40 }
  0xa7   : > { %1556 = vrot.lane.b32.xlu1 %v2090_v5, %s1989_s25 }
  0xa8   : > { %1554 = vrot.lane.b32.xlu0 %v2093_v6, %s1989_s25  ;;  %1558 = vrot.lane.b32.xlu2 %v2100_v7, %s1989_s25 }
  0xa9   : > { %v604_v42 = vpop.permute.xlu1 %603  ;;  %v524_v43 = vpop.permute.xlu0 %523 }
  0xaa   : > { %v612_v44 = vsel %vm611_vm6, %v604_v42, %v606_v27  ;;  %v2220_v45 = vsel %vm525_vm5, %v2140_v22, %v524_v43  ;;  %v780_v46 = vpop.permute.xlu2 %779  ;;  %v1902_v43 = vld [vmem:[%s2430_s1 + $0x20] sm:$0x3f] }
  0xab   : > { %1841 = vmatpush.msk.msrb.mxu2 %vm207_vm0, %v2220_v45  ;;  %1844 = vmatpush.msk.msrb.mxu3 %vm207_vm0, %v612_v44 }
  0xac   : > { %1842 = vmatmul.msk.f32.vlgmr.msrb.gmra.mxu2 %vm203_vm1, %v1836_v40  ;;  %1845 = vmatmul.msk.f32.vlgmr.msrb.gmra.mxu3 %vm203_vm1, %v1843_v47 }
  0xaf   : > { %1638 = vrot.lane.b32.xlu1 %v2093_v6, %s1990_s26 }
  0xb0   : > { %1636 = vrot.lane.b32.xlu0 %v2085_v4, %s1990_s26  ;;  %1640 = vrot.lane.b32.xlu2 %v2090_v5, %s1990_s26 }
  0xb1   : > { %v610_v48 = vpop.permute.xlu1 %609  ;;  %v608_v49 = vpop.permute.xlu0 %607 }
  0xb2   : > { %v613_v50 = vsel %vm611_vm6, %v606_v27, %v608_v49  ;;  %v614_v51 = vsel %vm611_vm6, %v608_v49, %v610_v48  ;;  %v864_v52 = vpop.permute.xlu2 %863 }
  0xb3   : > { %1846 = vmatpush.msk.msra.mxu0 %vm207_vm0, %v613_v50  ;;  %1848 = vmatpush.msk.msra.mxu1 %vm207_vm0, %v614_v51  ;;  %v1909_v51 = vld [vmem:[%s2430_s1 + $0x28] sm:$0x3f] }
  0xb4   : > { %1847 = vmatmul.msk.f32.vlgmr.msra.gmra.mxu0 %vm203_vm1, %v1843_v47  ;;  %1849 = vmatmul.msk.f32.vlgmr.msra.gmra.mxu1 %vm203_vm1, %v1843_v47 }
  0xb7   : > { %947 = vperm.xlu1 %1961, %v179_v53  }
  0xb8   : > { %1642 = vrot.lane.b32.xlu0 %v2100_v7, %s1990_s26 }
  0xb9   : > { %v694_v55 = vpop.permute.xlu1 %693  ;;  %v692_v56 = vpop.permute.xlu0 %691 }
  0xba   : > { %v700_v58 = vsel %vm697_vm7, %v694_v55, %v696_v41  ;;  %v698_v59 = vsel %vm697_vm7, %v690_v34, %v692_v56  ;;  %v699_v60 = vsel %vm697_vm7, %v692_v56, %v694_v55  ;;  %v983_v61 = vpop.permute.xlu2 %982  ;;  %v1916_v56 = vld [vmem:[%s2430_s1 + $0x30] sm:$0x3f] }
  0xbb   : > { %1851 = vmatpush.msk.msra.mxu2 %vm207_vm0, %v698_v59  ;;  %1853 = vmatpush.msk.msra.mxu3 %vm207_vm0, %v699_v60 }
  0xbc   : > { %1855 = vmatpush.msk.msrb.mxu0 %vm207_vm0, %v700_v58  ;;  %1852 = vmatmul.msk.f32.vlgmr.msra.gmra.mxu2 %vm203_vm1, %v1850_v57 }
  0xbd   : > { %1856 = vmatmul.msk.f32.vlgmr.msrb.gmra.mxu0 %vm203_vm1, %v1850_v57  ;;  %1854 = vmatmul.msk.f32.vlgmr.msra.gmra.mxu3 %vm203_vm1, %v1850_v57 }
  0xc1   : > { %v778_v62 = vpop.permute.xlu1 %777  ;;  %v776_v63 = vpop.permute.xlu0 %775 }
  0xc2   : > { %v785_v1 = vsel %vm783_vm8, %v778_v62, %v780_v46  ;;  %v784_v2 = vsel %vm783_vm8, %v776_v63, %v778_v62  ;;  %v989_v3 = vpop.permute.xlu2 %988 }
  0xc3   : > { %1858 = vmatpush.msk.msrb.mxu1 %vm207_vm0, %v784_v2  ;;  %1860 = vmatpush.msk.msrb.mxu2 %vm207_vm0, %v785_v1 }
  0xc4   : > { %1859 = vmatmul.msk.f32.vlgmr.msrb.gmra.mxu1 %vm203_vm1, %v1857_v0  ;;  %1861 = vmatmul.msk.f32.vlgmr.msrb.gmra.mxu2 %vm203_vm1, %v1857_v0 }
  0xc9   : > { %v862_v7 = vpop.permute.xlu1 %861  ;;  %v782_v8 = vpop.permute.xlu0 %781 }
  0xca   : > { %v870_v10 = vsel %vm869_vm9, %v862_v7, %v864_v52  ;;  %v786_v11 = vsel %vm783_vm8, %v780_v46, %v782_v8  ;;  %v1137_v12 = vpop.permute.xlu2 %1136 }
  0xcb   : > { %1862 = vmatpush.msk.msrb.mxu3 %vm207_vm0, %v786_v11  ;;  %1865 = vmatpush.msk.msra.mxu0 %vm207_vm0, %v870_v10  ;;  %v1923_v10 = vld [vmem:[%s2430_s1 + $0x38] sm:$0x3f] }
  0xcc   : > { %1866 = vmatmul.msk.f32.vlgmr.msra.gmra.mxu0 %vm203_vm1, %v1864_v9  ;;  %1863 = vmatmul.msk.f32.vlgmr.msrb.gmra.mxu3 %vm203_vm1, %v1857_v0 }
  0xd1   : > { %v868_v13 = vpop.permute.xlu1 %867  ;;  %v866_v14 = vpop.permute.xlu0 %865 }
  0xd2   : > { %v871_v15 = vsel %vm869_vm9, %v864_v52, %v866_v14  ;;  %v872_v16 = vsel %vm869_vm9, %v866_v14, %v868_v13  ;;  %v1219_v17 = vpop.permute.xlu2 %1218 }
  0xd3   : > { %1867 = vmatpush.msk.msra.mxu1 %vm207_vm0, %v871_v15  ;;  %1869 = vmatpush.msk.msra.mxu2 %vm207_vm0, %v872_v16  ;;  %v300_v15 = vpop.f32.mrf.mxu3 }
  0xd4   : > { %1868 = vmatmul.msk.f32.vlgmr.msra.gmra.mxu1 %vm203_vm1, %v1864_v9  ;;  %1870 = vmatmul.msk.f32.vlgmr.msra.gmra.mxu2 %vm203_vm1, %v1864_v9 }
  0xd5   : > { %1882 = vmatpush.msk.msrb.mxu2 %vm207_vm0, %v2085_v4  ;;  %v975_v4 = vld [vmem:[%s2430_s1] sm:$0x3f] }
  0xd9   : > { %v987_v18 = vpop.permute.xlu1 %986  ;;  %v985_v19 = vpop.permute.xlu0 %984 }
  0xda   : > { %v992_v21 = vsel %vm199_vm2, %v987_v18, %v989_v3  ;;  %v990_v22 = vsel %vm199_vm2, %v983_v61, %v985_v19  ;;  %v991_v23 = vsel %vm199_vm2, %v985_v19, %v987_v18  ;;  %v1301_v28 = vpop.permute.xlu2 %1300 }
  0xdb   : > { %1876 = vmatpush.msk.msra.mxu3 %vm207_vm0, %v990_v22  ;;  %1878 = vmatpush.msk.msrb.mxu0 %vm207_vm0, %v991_v23 }
  0xdc   : > { %1880 = vmatpush.msk.msrb.mxu1 %vm207_vm0, %v992_v21  ;;  %1877 = vmatmul.msk.f32.vlgmr.msra.gmra.mxu3 %vm203_vm1, %v1875_v20  ;;  %v1930_v21 = vld [vmem:[%s2430_s1 + $0x40] sm:$0x3f] }
  0xdd   : > { %1884 = vmatpush.msk.msrb.mxu3 %vm207_vm0, %v2093_v6  ;;  %1879 = vmatmul.msk.f32.vlgmr.msrb.gmra.mxu0 %vm203_vm1, %v1875_v20  ;;  %v1888_v6 = vld [vmem:[%s2430_s1 + $0x10] sm:$0x3f] }
  0xde   : > { %1886 = vmatpush.msk.msra.mxu0 %vm207_vm0, %v2090_v5  ;;  %1881 = vmatmul.msk.f32.vlgmr.msrb.gmra.mxu1 %vm203_vm1, %v1875_v20 }
  0xdf   : > { %1883 = vmatmul.msk.f32.vlgmr.msrb.gmra.mxu2 %vm203_vm1, %v975_v4 }
  0xe1   : > { %v1135_v24 = vpop.permute.xlu1 %1134  ;;  %v1133_v25 = vpop.permute.xlu0 %1132 }
  0xe2   : > { %v1141_v26 = vsel %vm353_vm3, %v1135_v24, %v1137_v12  ;;  %v1140_v27 = vsel %vm353_vm3, %v1133_v25, %v1135_v24  ;;  %v1307_v33 = vpop.permute.xlu2 %1306 }
  0xe3   : > { %1889 = vmatpush.msk.msra.mxu1 %vm207_vm0, %v1140_v27  ;;  %1891 = vmatpush.msk.msra.mxu2 %vm207_vm0, %v1141_v26 }
  0xe4   : > { %1885 = vmatmul.msk.f32.vlgmr.msrb.gmra.mxu3 %vm203_vm1, %v975_v4 }
  0xe5   : > { %1887 = vmatmul.msk.f32.vlgmr.msra.gmra.mxu0 %vm203_vm1, %v975_v4 }
  0xe6   : > { %1890 = vmatmul.msk.f32.vlgmr.msra.gmra.mxu1 %vm203_vm1, %v1888_v6 }
  0xe7   : > { %1892 = vmatmul.msk.f32.vlgmr.msra.gmra.mxu2 %vm203_vm1, %v1888_v6 }
  0xe9   : > { %v1217_v5 = vpop.permute.xlu1 %1216  ;;  %v1139_v29 = vpop.permute.xlu0 %1138 }
  0xea   : > { %v1224_v30 = vsel %vm439_vm4, %v1217_v5, %v1219_v17  ;;  %v1142_v31 = vsel %vm353_vm3, %v1137_v12, %v1139_v29  ;;  %v1389_v40 = vpop.permute.xlu2 %1388 }
  0xeb   : > { %1893 = vmatpush.msk.msra.mxu3 %vm207_vm0, %v1142_v31  ;;  %1896 = vmatpush.msk.msrb.mxu0 %vm207_vm0, %v1224_v30 }
  0xec   : > { %1894 = vmatmul.msk.f32.vlgmr.msra.gmra.mxu3 %vm203_vm1, %v1888_v6 }
  0xed   : > { %1897 = vmatmul.msk.f32.vlgmr.msrb.gmra.mxu0 %vm203_vm1, %v1895_v32 }
  0xf1   : > { %v1223_v34 = vpop.permute.xlu1 %1222  ;;  %v1221_v35 = vpop.permute.xlu0 %1220 }
  0xf2   : > { %v1225_v36 = vsel %vm439_vm4, %v1219_v17, %v1221_v35  ;;  %v1226_v37 = vsel %vm439_vm4, %v1221_v35, %v1223_v34  ;;  %v1471_v48 = vpop.permute.xlu2 %1470 }
  0xf3   : > { %1898 = vmatpush.msk.msrb.mxu1 %vm207_vm0, %v1225_v36  ;;  %1900 = vmatpush.msk.msrb.mxu2 %vm207_vm0, %v1226_v37 }
  0xf4   : > { %1899 = vmatmul.msk.f32.vlgmr.msrb.gmra.mxu1 %vm203_vm1, %v1895_v32  ;;  %1901 = vmatmul.msk.f32.vlgmr.msrb.gmra.mxu2 %vm203_vm1, %v1895_v32 }
  0xf9   : > { %v1305_v41 = vpop.permute.xlu1 %1304  ;;  %v1303_v42 = vpop.permute.xlu0 %1302 }
  0xfa   : > { %v2335_v44 = vsel %vm525_vm5, %v1305_v41, %v1307_v33  ;;  %v2338_v46 = vsel %vm525_vm5, %v1301_v28, %v1303_v42  ;;  %v2341_v47 = vsel %vm525_vm5, %v1303_v42, %v1305_v41  ;;  %v1553_v59 = vpop.permute.xlu2 %1552 }
  0xfb   : > { %1903 = vmatpush.msk.msrb.mxu3 %vm207_vm0, %v2338_v46  ;;  %1905 = vmatpush.msk.msra.mxu0 %vm207_vm0, %v2341_v47 }
  0xfc   : > { %1904 = vmatmul.msk.f32.vlgmr.msrb.gmra.mxu3 %vm203_vm1, %v1902_v43  ;;  %1907 = vmatpush.msk.msra.mxu1 %vm207_vm0, %v2335_v44 }
  0xfd   : > { %1906 = vmatmul.msk.f32.vlgmr.msra.gmra.mxu0 %vm203_vm1, %v1902_v43  ;;  %1908 = vmatmul.msk.f32.vlgmr.msra.gmra.mxu1 %vm203_vm1, %v1902_v43 }
 0x101   : > { %v1387_v49 = vpop.permute.xlu1 %1386 }
 0x102   : > { %v1385_v50 = vpop.permute.xlu0 %1384  ;;  %v1393_v52 = vsel %vm611_vm6, %v1387_v49, %v1389_v40  ;;  %v1559_v2 = vpop.permute.xlu2 %1558 }
 0x103   : > { %v1392_v53 = vsel %vm611_vm6, %v1385_v50, %v1387_v49  ;;  %1912 = vmatpush.msk.msra.mxu3 %vm207_vm0, %v1393_v52 }
 0x104   : > { %1910 = vmatpush.msk.msra.mxu2 %vm207_vm0, %v1392_v53  ;;  %1913 = vmatmul.msk.f32.vlgmr.msra.gmra.mxu3 %vm203_vm1, %v1909_v51 }
 0x105   : > { %1911 = vmatmul.msk.f32.vlgmr.msra.gmra.mxu2 %vm203_vm1, %v1909_v51 }
 0x109   : > { %v1469_v54 = vpop.permute.xlu1 %1468  ;;  %v231_v60 = vpop.f32.mrf.mxu0 }
 0x10a   : > { %v1391_v55 = vpop.permute.xlu0 %1390  ;;  %v1476_v57 = vsel %vm697_vm7, %v1469_v54, %v1471_v48  ;;  %v1641_v16 = vpop.permute.xlu2 %1640  ;;  %v301_v6 = vadd.f32 %v300_v15, %v231_v60 }
 0x10b   : > { %v1394_v58 = vsel %vm611_vm6, %v1389_v40, %v1391_v55  ;;  %1917 = vmatpush.msk.msrb.mxu1 %vm207_vm0, %v1476_v57  ;;  %v251_v61 = vpop.f32.mrf.mxu1 }
 0x10c   : > { %1914 = vmatpush.msk.msrb.mxu0 %vm207_vm0, %v1394_v58  ;;  %1918 = vmatmul.msk.f32.vlgmr.msrb.gmra.mxu1 %vm203_vm1, %v1916_v56 }
 0x10d   : > { %1915 = vmatmul.msk.f32.vlgmr.msrb.gmra.mxu0 %vm203_vm1, %v1909_v51 }
 0x111   : > { %v1475_v62 = vpop.permute.xlu1 %1474  ;;  %v320_v3 = vpop.f32.mrf.mxu0 }
 0x112   : > { %v1473_v63 = vpop.permute.xlu0 %1472  ;;  %v271_v7 = vpop.f32.mrf.mxu2  ;;  %v321_v34 = vadd.f32 %v320_v3, %v251_v61 }
 0x113   : > { %v1477_v0 = vsel %vm697_vm7, %v1471_v48, %v1473_v63  ;;  %v1478_v1 = vsel %vm697_vm7, %v1473_v63, %v1475_v62  ;;  %v340_v14 = vpop.f32.mrf.mxu1 }
 0x114   : > { %1919 = vmatpush.msk.msrb.mxu2 %vm207_vm0, %v1477_v0  ;;  %1921 = vmatpush.msk.msrb.mxu3 %vm207_vm0, %v1478_v1  ;;  %v341_v41 = vadd.f32 %v340_v14, %v271_v7 }
 0x115   : > { %1920 = vmatmul.msk.f32.vlgmr.msrb.gmra.mxu2 %vm203_vm1, %v1916_v56  ;;  %1922 = vmatmul.msk.f32.vlgmr.msrb.gmra.mxu3 %vm203_vm1, %v1916_v56 }
 0x117   : > { %v403_v24 = vpop.f32.mrf.mxu3 }
 0x118   : > { %v427_v40 = vadd.f32 %v403_v24, %v321_v34 }
 0x119   : > { %v1557_v8 = vpop.permute.xlu1 %1556  ;;  %v423_v17 = vpop.f32.mrf.mxu0 }
 0x11a   : > { %v1555_v9 = vpop.permute.xlu0 %1554  ;;  %v1562_v11 = vsel %vm783_vm8, %v1557_v8, %v1559_v2  ;;  %v383_v18 = vpop.f32.mrf.mxu2  ;;  %v428_v50 = vadd.f32 %v423_v17, %v341_v41 }
 0x11b   : > { %v1560_v12 = vsel %vm783_vm8, %v1553_v59, %v1555_v9  ;;  %v1561_v13 = vsel %vm783_vm8, %v1555_v9, %v1557_v8  ;;  %1928 = vmatpush.msk.msra.mxu2 %vm207_vm0, %v1562_v11  ;;  %v469_v4 = vpop.f32.mrf.mxu1  ;;  %v426_v30 = vadd.f32 %v383_v18, %v301_v6 }
 0x11c   : > { %1924 = vmatpush.msk.msra.mxu0 %vm207_vm0, %v1560_v12  ;;  %1926 = vmatpush.msk.msra.mxu1 %vm207_vm0, %v1561_v13 }
 0x11d   : > { %1925 = vmatmul.msk.f32.vlgmr.msra.gmra.mxu0 %vm203_vm1, %v1923_v10  ;;  %1927 = vmatmul.msk.f32.vlgmr.msra.gmra.mxu1 %vm203_vm1, %v1923_v10  ;;  %v512_v33 = vadd.f32 %v469_v4, %v426_v30 }
 0x11e   : > { %1929 = vmatmul.msk.f32.vlgmr.msra.gmra.mxu2 %vm203_vm1, %v1923_v10 }
 0x120   : > { %v509_v29 = vpop.f32.mrf.mxu3 }
 0x121   : > { %v1639_v19 = vpop.permute.xlu1 %1638  ;;  %v555_v27 = vpop.f32.mrf.mxu0  ;;  %v514_v54 = vadd.f32 %v509_v29, %v428_v50 }
 0x122   : > { %v1637_v20 = vpop.permute.xlu0 %1636  ;;  %v1645_v22 = vsel %vm869_vm9, %v1639_v19, %v1641_v16  ;;  %v489_v28 = vpop.f32.mrf.mxu2  ;;  %v598_v36 = vadd.f32 %v555_v27, %v512_v33 }
 0x123   : > { %v1644_v23 = vsel %vm869_vm9, %v1637_v20, %v1639_v19  ;;  %1933 = vmatpush.msk.msrb.mxu0 %vm207_vm0, %v1645_v22  ;;  %v575_v5 = vpop.f32.mrf.mxu1  ;;  %v513_v49 = vadd.f32 %v489_v28, %v427_v40 }
 0x124   : > { %1931 = vmatpush.msk.msra.mxu3 %vm207_vm0, %v1644_v23 }
 0x125   : > { %1932 = vmatmul.msk.f32.vlgmr.msra.gmra.mxu3 %vm203_vm1, %v1930_v21  ;;  %1934 = vmatmul.msk.f32.vlgmr.msrb.gmra.mxu0 %vm203_vm1, %v1930_v21  ;;  %v599_v53 = vadd.f32 %v575_v5, %v513_v49 }
 0x129   : > { %v2400_v57 = vpop.permute.xlu1 %947 }
 0x12a   : > { %v1643_v25 = vpop.permute.xlu0 %1642 }
 0x12b   : > { %v1646_v26 = vsel %vm869_vm9, %v1641_v16, %v1643_v25 }
 0x12c   : > { %1935 = vmatpush.msk.msrb.mxu1 %vm207_vm0, %v1646_v26 }
 0x12d   : > { %1936 = vmatmul.msk.f32.vlgmr.msrb.gmra.mxu1 %vm203_vm1, %v1930_v21 }
 0x12f   : > { %v595_v32 = vpop.f32.mrf.mxu2  ;;  %v641_v37 = vpop.f32.mrf.mxu3 }
 0x130   : > { %v684_v42 = vadd.f32 %v641_v37, %v598_v36  ;;  %v600_v60 = vadd.f32 %v595_v32, %v514_v54 }
 0x131   : > { %v661_v31 = vpop.f32.mrf.mxu0  ;;  %v681_v35 = vpop.f32.mrf.mxu1 }
 0x132   : > { %v685_v56 = vadd.f32 %v661_v31, %v599_v53  ;;  %v686_v1 = vadd.f32 %v681_v35, %v600_v60 }
 0x13a   : > { %v767_v43 = vpop.f32.mrf.mxu0 }
 0x13b   : > { %v772_v7 = vadd.f32 %v767_v43, %v686_v1 }
 0x13f   : > { %v727_v48 = vpop.f32.mrf.mxu2 }
 0x140   : > { %v770_v51 = vadd.f32 %v727_v48, %v684_v42  ;;  %v747_v59 = vpop.f32.mrf.mxu3 }
 0x141   : > { %v813_v52 = vpop.f32.mrf.mxu1  ;;  %v771_v63 = vadd.f32 %v747_v59, %v685_v56 }
 0x142   : > { %v856_v55 = vadd.f32 %v813_v52, %v770_v51 }
 0x147   : > { %v833_v0 = vpop.f32.mrf.mxu2 }
 0x148   : > { %v857_v2 = vadd.f32 %v833_v0, %v771_v63 }
 0x149   : > { %v899_v58 = vpop.f32.mrf.mxu0 }
 0x14a   : > { %v942_v61 = vadd.f32 %v899_v58, %v856_v55 }
 0x14c   : > { %v950_v62 = vadd.f32 %v2400_v57, %v942_v61 }
 0x14e   : > { %1963 = vtanh.f32 %v950_v62 }
 0x14f   : > { %v853_v9 = vpop.f32.mrf.mxu3 }
 0x150   : > { %v858_v13 = vadd.f32 %v853_v9, %v772_v7 }
 0x151   : > { %v919_v3 = vpop.f32.mrf.mxu1 }
 0x152   : > { %v943_v8 = vadd.f32 %v919_v3, %v857_v2 }
 0x154   : > { %v1964_v10 = vpop.eup %1963  ;;  %v951_v11 = vadd.f32 %v2400_v57, %v943_v8 }
 0x155   : > { %v956_v12 = vadd.f32 1.0, %v1964_v10 }
 0x156   : > { %1965 = vtanh.f32 %v951_v11 }
 0x157   : > { %v959_v14 = vmul.f32 0.5, %v956_v12  ;;  %v939_v15 = vpop.f32.mrf.mxu2 }
 0x158   : > { %v944_v16 = vadd.f32 %v939_v15, %v858_v13 }
 0x159   : > { %v965_v17 = vadd.f32 %v959_v14, %v2200_v39 }
 0x15a   : > { %v952_v18 = vadd.f32 %v2400_v57, %v944_v16  ;;  %v1039_v26 = vpop.f32.mrf.mxu0 }
 0x15b   : > { %968 = vst [vmem:[%s2408_s18] sm:$0x3f] %v965_v17  ;;  %v1059_v28 = vpop.f32.mrf.mxu1 }
 0x15c   : > { %v1966_v19 = vpop.eup %1965  ;;  %1967 = vtanh.f32 %v952_v18 }
 0x15d   : > { %v957_v20 = vadd.f32 1.0, %v1966_v19 }
 0x15f   : > { %v960_v21 = vmul.f32 0.5, %v957_v20  ;;  %v1019_v27 = vpop.f32.mrf.mxu3 }
 0x161   : > { %v966_v22 = vadd.f32 %v960_v21, %v2197_v38 }
 0x162   : > { %v1968_v23 = vpop.eup %1967  ;;  %v1088_v39 = vpop.f32.mrf.mxu2 }
 0x163   : > { %969 = vst [vmem:[%s2408_s18 + $0x8] sm:$0x3f] %v966_v22  ;;  %v958_v4 = vadd.f32 1.0, %v1968_v23  ;;  %v1128_v6 = vpop.f32.mrf.mxu0  ;;  %v1169_v29 = vpop.f32.mrf.mxu1  ;;  %v1089_v42 = vadd.f32 %v1088_v39, %v1019_v27 }
 0x164   : > { %v1129_v49 = vadd.f32 %v1128_v6, %v1059_v28 }
 0x165   : > { %v961_v24 = vmul.f32 0.5, %v958_v4  ;;  %v1212_v50 = vadd.f32 %v1169_v29, %v1089_v42 }
 0x167   : > { %v967_v25 = vadd.f32 %v961_v24, %v2220_v45  ;;  %v1108_v5 = vpop.f32.mrf.mxu3 }
 0x168   : > { %v1109_v35 = vadd.f32 %v1108_v5, %v1039_v26 }
 0x169   : > { %970 = vst [vmem:[%s2408_s18 + $0x10] sm:$0x3f] %v967_v25 }
 0x16a   : > { %v1189_v30 = vpop.f32.mrf.mxu2 }
 0x16b   : > { %v1253_v31 = vpop.f32.mrf.mxu0  ;;  %v1213_v40 = vadd.f32 %v1189_v30, %v1109_v35 }
 0x16c   : > { %v1296_v56 = vadd.f32 %v1253_v31, %v1212_v50 }
 0x16f   : > { %v1209_v32 = vpop.f32.mrf.mxu3 }
 0x170   : > { %v1214_v55 = vadd.f32 %v1209_v32, %v1129_v49 }
 0x171   : > { %v1273_v33 = vpop.f32.mrf.mxu1 }
 0x172   : > { %v1297_v43 = vadd.f32 %v1273_v33, %v1213_v40 }
 0x177   : > { %v1293_v34 = vpop.f32.mrf.mxu2 }
 0x178   : > { %v1298_v61 = vadd.f32 %v1293_v34, %v1214_v55 }
 0x17a   : > { %v1357_v38 = vpop.f32.mrf.mxu0  ;;  %v1377_v37 = vpop.f32.mrf.mxu1 }
 0x17b   : > { %v1381_v52 = vadd.f32 %v1357_v38, %v1297_v43  ;;  %v1382_v3 = vadd.f32 %v1377_v37, %v1298_v61 }
 0x17f   : > { %v1337_v36 = vpop.f32.mrf.mxu3 }
 0x180   : > { %v1380_v62 = vadd.f32 %v1337_v36, %v1296_v56 }
 0x187   : > { %v1441_v51 = vpop.f32.mrf.mxu3 }
 0x188   : > { %v1421_v41 = vpop.f32.mrf.mxu2  ;;  %v1465_v58 = vadd.f32 %v1441_v51, %v1381_v52 }
 0x189   : > { %v1505_v48 = vpop.f32.mrf.mxu1  ;;  %v1464_v0 = vadd.f32 %v1421_v41, %v1380_v62 }
 0x18a   : > { %v1461_v45 = vpop.f32.mrf.mxu0 }
 0x18b   : > { %v1466_v8 = vadd.f32 %v1461_v45, %v1382_v3  ;;  %v1548_v9 = vadd.f32 %v1505_v48, %v1464_v0 }
 0x198   : > { %v1525_v53 = vpop.f32.mrf.mxu2  ;;  %v1545_v63 = vpop.f32.mrf.mxu3 }
 0x199   : > { %v1549_v59 = vadd.f32 %v1525_v53, %v1465_v58  ;;  %v1550_v12 = vadd.f32 %v1545_v63, %v1466_v8 }
 0x19a   : > { %v1589_v54 = vpop.f32.mrf.mxu0  ;;  %v1609_v60 = vpop.f32.mrf.mxu1 }
 0x19b   : > { %v1633_v1 = vadd.f32 %v1609_v60, %v1549_v59  ;;  %v1632_v13 = vadd.f32 %v1589_v54, %v1548_v9 }
 0x1a1   : > { %v1629_v11 = vpop.f32.mrf.mxu2 }
 0x1a2   : > { %v1693_v2 = vpop.f32.mrf.mxu0  ;;  %v1634_v15 = vadd.f32 %v1629_v11, %v1550_v12 }
 0x1a3   : > { %v1717_v7 = vadd.f32 %v1693_v2, %v1633_v1 }
 0x1a5   : > { %v1720_v10 = vadd.f32 %v1717_v7, %v2400_v57 }
 0x1a7   : > { %1969 = vtanh.f32 %v1720_v10 }
 0x1a8   : > { %v1673_v14 = vpop.f32.mrf.mxu3 }
 0x1a9   : > { %v1716_v16 = vadd.f32 %v1673_v14, %v1632_v13 }
 0x1aa   : > { %v1713_v17 = vpop.f32.mrf.mxu1 }
 0x1ab   : > { %v1719_v18 = vadd.f32 %v1716_v16, %v2400_v57  ;;  %v1718_v19 = vadd.f32 %v1713_v17, %v1634_v15 }
 0x1ad   : > { %v1970_v20 = vpop.eup %1969  ;;  %1971 = vtanh.f32 %v1719_v18  ;;  %v1721_v21 = vadd.f32 %v1718_v19, %v2400_v57 }
 0x1ae   : > { %v1726_v22 = vadd.f32 1.0, %v1970_v20 }
 0x1af   : > { %1973 = vtanh.f32 %v1721_v21 }
 0x1b0   : > { %v1729_v23 = vmul.f32 0.5, %v1726_v22 }
 0x1b2   : > { %v1735_v4 = vadd.f32 %v1729_v23, %v2341_v47 }
 0x1b3   : > { %v1972_v24 = vpop.eup %1971 }
 0x1b4   : > { %1938 = vst [vmem:[%s2408_s18 + $0x20] sm:$0x3f] %v1735_v4  ;;  %v1725_v25 = vadd.f32 1.0, %v1972_v24 }
 0x1b5   : > { %v1974_v26 = vpop.eup %1973 }
 0x1b6   : > { %v1728_v27 = vmul.f32 0.5, %v1725_v25  ;;  %v1727_v28 = vadd.f32 1.0, %v1974_v26 }
 0x1b8   : > { %v1734_v39 = vadd.f32 %v1728_v27, %v2338_v46  ;;  %v1730_v6 = vmul.f32 0.5, %v1727_v28 }
 0x1ba   : > { %1937 = vst [vmem:[%s2408_s18 + $0x18] sm:$0x3f] %v1734_v39  ;;  %v1736_v5 = vadd.f32 %v1730_v6, %v2335_v44 }
 0x1bc   : > { %1939 = vst [vmem:[%s2408_s18 + $0x28] sm:$0x3f] %v1736_v5 }
 0x1bd PF: > { %s13_s12 = sadd.s32 1, %s1981_s12  }
 0x1be   : > { %p10_p4 = scmp.ge.s32.totalorder %s13_s12, 4  }
 0x1c0   :  { %12 = sbr.rel (!%p10_p4) target bundleno = 1 (0x1), region = 72 }

</bundles_post_ra>
